<compile_context>
chip_gen: v6e
topology: v6e:2x2x1
jax: 0.10.0
libtpu: 0.0.40
codegen_flags: <defaults>
</compile_context>

<pallas_src>
import functools

import jax
import jax.numpy as jnp
from jax.experimental import pallas as pl
from jax.experimental.pallas import tpu as pltpu


def _round_up(x, m):
    return ((x + m - 1) // m) * m


def clip_head_kernel(x_ref, w1_ref, b1_ref, w2_ref, b2_ref, o_ref):
    # In-kernel bf16 cast of x (VPU has plenty of slack; saves an HBM pass).
    x = x_ref[...].astype(jnp.bfloat16)                       # (tb, D) bf16
    h = jnp.dot(x, w1_ref[...], preferred_element_type=jnp.float32)
    h = jnp.maximum(h + b1_ref[...], 0.0)                     # f32 bias + ReLU (VPU)
    y = jnp.dot(h.astype(jnp.bfloat16), w2_ref[...],
                preferred_element_type=jnp.float32) + b2_ref[...]
    o_ref[...] = y.astype(o_ref.dtype)                        # (tb, 128) lane-dense bf16 store


def prepare_clip_head_params(w1, b1, w2, b2, *, lane=128):
    """One-time weight prep: cast to bf16, lane-pad the tiny 2-wide output."""
    D, H = w1.shape
    O = w2.shape[1]
    o_pad = lane
    b1p = b1.reshape(1, H).astype(jnp.float32)
    w2p = jnp.zeros((H, o_pad), jnp.float32).at[:, :O].set(w2.astype(jnp.float32))
    b2p = jnp.zeros((1, o_pad), jnp.float32).at[:, :O].set(
        b2.reshape(1, O).astype(jnp.float32))
    return (w1.astype(jnp.bfloat16), b1p, w2p.astype(jnp.bfloat16), b2p, O)


def clip_head(x, params, *, tb=2048):
    """Fused Linear(D->H) -> ReLU -> Linear(H->O) head.

    x: (B, D); params from prepare_clip_head_params. Returns (B, O) in x.dtype.
    """
    w1_bf, b1, w2_bf, b2p, O = params
    B, D = x.shape
    H = w1_bf.shape[1]
    O_PAD = w2_bf.shape[1]

    SUB = 16  # bf16 sublane tile -> keep row-tile 16-aligned for the bf16 output

    # Large tile to amortize per-step overhead, but capped so the grid has
    # >= 2 steps when B is large enough (both TensorCores busy on v7x).
    half_b = _round_up(pl.cdiv(B, 2), SUB)
    tb_eff = max(SUB, min(_round_up(tb, SUB), half_b))
    grid = (pl.cdiv(B, tb_eff),)

    flops = 2 * B * D * H + 2 * B * H * O_PAD
    bytes_accessed = (x.size * x.dtype.itemsize
                      + w1_bf.size * 2 + w2_bf.size * 2
                      + b1.size * 4 + b2p.size * 4
                      + B * O_PAD * 2)
    cost = pl.CostEstimate(flops=flops, transcendentals=0,
                           bytes_accessed=bytes_accessed)

    out = pl.pallas_call(
        clip_head_kernel,
        out_shape=jax.ShapeDtypeStruct((B, O_PAD), jnp.bfloat16),
        grid_spec=pltpu.PrefetchScalarGridSpec(
            num_scalar_prefetch=0,
            grid=grid,
            in_specs=[
                pl.BlockSpec((tb_eff, D), lambda i: (i, 0)),   # x tile (streamed, f32)
                pl.BlockSpec((D, H), lambda i: (0, 0)),        # W1 (resident, bf16)
                pl.BlockSpec((1, H), lambda i: (0, 0)),        # b1 (f32)
                pl.BlockSpec((H, O_PAD), lambda i: (0, 0)),    # W2 (lane-padded, bf16)
                pl.BlockSpec((1, O_PAD), lambda i: (0, 0)),    # b2 (lane-padded, f32)
            ],
            out_specs=pl.BlockSpec((tb_eff, O_PAD), lambda i: (i, 0)),
        ),
        compiler_params=pltpu.CompilerParams(
            dimension_semantics=("parallel",)),
        cost_estimate=cost,
    )(x, w1_bf, b1, w2_bf, b2p)

    # Strip the lane padding of the 2-logit output (partial last row-block is
    # already masked by Pallas on writeback; no batch padding needed).
    return out[:, :O].astype(x.dtype)


if __name__ == "__main__":
    # Module-consistent shapes: embed_dim=512 (spec default), hidden=256, out=2.
    B, D, H, O = 8, 512, 256, 2

    key = jax.random.PRNGKey(0)
    kx, k1, k2, k3, k4 = jax.random.split(key, 5)

    x = jax.random.normal(kx, (B, D), dtype=jnp.float32)
    # Deterministic PyTorch-like init scale (1/sqrt(fan_in)).
    w1 = jax.random.uniform(k1, (D, H), jnp.float32, -1.0, 1.0) / jnp.sqrt(D)
    b1 = jax.random.uniform(k2, (H,), jnp.float32, -1.0, 1.0) / jnp.sqrt(D)
    w2 = jax.random.uniform(k3, (H, O), jnp.float32, -1.0, 1.0) / jnp.sqrt(H)
    b2 = jax.random.uniform(k4, (O,), jnp.float32, -1.0, 1.0) / jnp.sqrt(H)

    # Weight prep happens once, outside the per-call path.
    params = prepare_clip_head_params(w1, b1, w2, b2)
    run = jax.jit(functools.partial(clip_head, params=params))

    out = jax.block_until_ready(run(x))

    # Pure-JAX reference with the same bf16 quantization (x, w1, w2, hidden h),
    # f32 accumulation/bias math.
    xb = x.astype(jnp.bfloat16).astype(jnp.float32)
    w1b = w1.astype(jnp.bfloat16).astype(jnp.float32)
    w2b = w2.astype(jnp.bfloat16).astype(jnp.float32)
    hb = jnp.maximum(xb @ w1b + b1, 0.0).astype(jnp.bfloat16).astype(jnp.float32)
    ref = hb @ w2b + b2

    assert out.shape == (B, O)
    assert bool(jnp.all(jnp.isfinite(out)))
    assert jnp.allclose(out, ref, atol=2e-2, rtol=2e-2)

    print("KERNEL_OK")
</pallas_src>

<mosaic_0001>
module attributes {stable_mosaic.version = 11 : i64} {
  func.func @clip_head_kernel(%arg0: i32, %arg1: memref<16x512xf32, #tpu.memory_space<vmem>>, %arg2: memref<512x256xbf16, #tpu.memory_space<vmem>>, %arg3: memref<1x256xf32, #tpu.memory_space<vmem>>, %arg4: memref<256x128xbf16, #tpu.memory_space<vmem>>, %arg5: memref<1x128xf32, #tpu.memory_space<vmem>>, %arg6: memref<16x128xbf16, #tpu.memory_space<vmem>>) attributes {dimension_semantics = [#tpu.dimension_semantics<parallel>], iteration_bounds = array<i64: 1>, scalar_prefetch = 0 : i64, scratch_operands = 0 : i64, tpu.core_type = #tpu.core_type<tc>, window_params = [{transform_indices = @transform_0, window_bounds = array<i64: 16, 512>}, {pipeline_mode = #tpu.pipeline_mode<synchronous>, transform_indices = @transform_1, window_bounds = array<i64: 512, 256>}, {pipeline_mode = #tpu.pipeline_mode<synchronous>, transform_indices = @transform_2, window_bounds = array<i64: 1, 256>}, {pipeline_mode = #tpu.pipeline_mode<synchronous>, transform_indices = @transform_3, window_bounds = array<i64: 256, 128>}, {pipeline_mode = #tpu.pipeline_mode<synchronous>, transform_indices = @transform_4, window_bounds = array<i64: 1, 128>}, {transform_indices = @transform_5, window_bounds = array<i64: 16, 128>}]} {
    %c0 = arith.constant 0 : index
    %c0_0 = arith.constant 0 : index
    %0 = vector.load %arg1[%c0, %c0_0] : memref<16x512xf32, #tpu.memory_space<vmem>>, vector<16x512xf32>
    %1 = arith.truncf %0 : vector<16x512xf32> to vector<16x512xbf16>
    %c0_1 = arith.constant 0 : index
    %c0_2 = arith.constant 0 : index
    %2 = vector.load %arg2[%c0_1, %c0_2] : memref<512x256xbf16, #tpu.memory_space<vmem>>, vector<512x256xbf16>
    %cst = arith.constant dense<0.000000e+00> : vector<16x256xf32>
    %3 = tpu.matmul %1, %2, %cst {dimension_numbers = #tpu.dot_dimension_numbers<[1], [0], [0], [1], [0, 0, 1, 1], [], []>} : vector<16x512xbf16>, vector<512x256xbf16>, vector<16x256xf32> -> vector<16x256xf32>
    %c0_3 = arith.constant 0 : index
    %c0_4 = arith.constant 0 : index
    %4 = vector.load %arg3[%c0_3, %c0_4] : memref<1x256xf32, #tpu.memory_space<vmem>>, vector<1x256xf32>
    %5 = vector.broadcast %4 : vector<1x256xf32> to vector<16x256xf32>
    %6 = arith.addf %3, %5 : vector<16x256xf32>
    %cst_5 = arith.constant 0.000000e+00 : f32
    %7 = vector.broadcast %cst_5 : f32 to vector<16x256xf32>
    %8 = arith.maximumf %6, %7 : vector<16x256xf32>
    %9 = arith.truncf %8 : vector<16x256xf32> to vector<16x256xbf16>
    %c0_6 = arith.constant 0 : index
    %c0_7 = arith.constant 0 : index
    %10 = vector.load %arg4[%c0_6, %c0_7] : memref<256x128xbf16, #tpu.memory_space<vmem>>, vector<256x128xbf16>
    %cst_8 = arith.constant dense<0.000000e+00> : vector<16x128xf32>
    %11 = tpu.matmul %9, %10, %cst_8 {dimension_numbers = #tpu.dot_dimension_numbers<[1], [0], [0], [1], [0, 0, 1, 1], [], []>} : vector<16x256xbf16>, vector<256x128xbf16>, vector<16x128xf32> -> vector<16x128xf32>
    %c0_9 = arith.constant 0 : index
    %c0_10 = arith.constant 0 : index
    %12 = vector.load %arg5[%c0_9, %c0_10] : memref<1x128xf32, #tpu.memory_space<vmem>>, vector<1x128xf32>
    %13 = vector.broadcast %12 : vector<1x128xf32> to vector<16x128xf32>
    %14 = arith.addf %11, %13 : vector<16x128xf32>
    %15 = arith.truncf %14 : vector<16x128xf32> to vector<16x128xbf16>
    %c0_11 = arith.constant 0 : index
    %c0_12 = arith.constant 0 : index
    %16 = vector.load %arg6[%c0_11, %c0_12] : memref<16x128xbf16, #tpu.memory_space<vmem>>, vector<16x128xbf16>
    tpu.vector_store %arg6[%c0_11, %c0_12], %15 {strides = array<i32>} : memref<16x128xbf16, #tpu.memory_space<vmem>>, vector<16x128xbf16>,
    return
  }
  func.func @transform_0(%arg0: i32) -> (i32, i32) {
    %c0_i32 = arith.constant 0 : i32
    %c0_i32_0 = arith.constant 0 : i32
    return %arg0, %c0_i32 : i32, i32
  }
  func.func @transform_1(%arg0: i32) -> (i32, i32) {
    %c0_i32 = arith.constant 0 : i32
    %c0_i32_0 = arith.constant 0 : i32
    %c0_i32_1 = arith.constant 0 : i32
    return %c0_i32, %c0_i32_0 : i32, i32
  }
  func.func @transform_2(%arg0: i32) -> (i32, i32) {
    %c0_i32 = arith.constant 0 : i32
    %c0_i32_0 = arith.constant 0 : i32
    %c0_i32_1 = arith.constant 0 : i32
    return %c0_i32, %c0_i32_0 : i32, i32
  }
  func.func @transform_3(%arg0: i32) -> (i32, i32) {
    %c0_i32 = arith.constant 0 : i32
    %c0_i32_0 = arith.constant 0 : i32
    %c0_i32_1 = arith.constant 0 : i32
    return %c0_i32, %c0_i32_0 : i32, i32
  }
  func.func @transform_4(%arg0: i32) -> (i32, i32) {
    %c0_i32 = arith.constant 0 : i32
    %c0_i32_0 = arith.constant 0 : i32
    %c0_i32_1 = arith.constant 0 : i32
    return %c0_i32, %c0_i32_0 : i32, i32
  }
  func.func @transform_5(%arg0: i32) -> (i32, i32) {
    %c0_i32 = arith.constant 0 : i32
    %c0_i32_0 = arith.constant 0 : i32
    return %arg0, %c0_i32 : i32, i32
  }
}

</mosaic_0001>

<bundles_post_ra>
// kernel: clip_head.1
= control target key start
LH: loop header
LB: loop body
LE: loop exit
PB: predicated region body
PF: predicated region fallthrough
CT: control target
= control target key end

     0   :  { %10 = vsyncpa [#allocation3], 0  ;;  %s1145_s0 = inlined_call_operand.hbm [shape: f32[8,512], index: 0, kind: input, shape index: {}]   ;;  %s1146_s1 = inlined_call_operand.hbm [shape: bf16[512,256], index: 1, kind: input, shape index: {}]   ;;  %s1147_s2 = inlined_call_operand.vmem [shape: f32[1,256], index: 2, kind: input, shape index: {}]   ;;  %s1148_s3 = inlined_call_operand.hbm [shape: bf16[256,128], index: 3, kind: input, shape index: {}]   ;;  %s1149_s4 = inlined_call_operand.vmem [shape: f32[1,128], index: 4, kind: input, shape index: {}]   ;;  %s1150_s5 = inlined_call_operand.vmem [shape: bf16[8,128], index: 5, kind: output, shape index: {}]  }
   0x1   :  { %11 = vsyncpa [#allocation5], 0 }
   0x2   :  { %16 = vsyncadd [#allocation3], 512  ;;  %s1088_s18 = smov [#allocation4]  }
   0x3   :  { %s29_s19 = sshll.u32 %s1088_s18, 4  ;;  %s30_s19 = int_to_ptr.vmem [resolvable:$true] %s29_s19 }
   0x4   :  { %s1032_s20 = scalar_lea.vmem %s30_s19, 8192  ;;  %p1037_p1 = scmp.lt.s32.totalorder %s30_s19, %s30_s19 }
   0x5   :  { %p1033_p0 = scmp.ne.s32.totalorder %s30_s19, %s1032_s20  ;;  %p1038_p2 = scmp.lt.s32.totalorder %s1032_s20, %s1032_s20 }
   0x7   :  { %p1039_p3 = por %p1038_p2, %p1037_p1 }
   0x9   :  { %p1040_p4 = pnand %p1039_p3, %p1033_p0 }
   0xb   :  { %1043 = shalt.err (!%p1040_p4)
}
   0xc   :  { %s1089_s21 = smov 128   ;;  %s1090_s22 = smov 8  }
   0xd   :  { %35 = dma.hbm_to_vmem [thread:$0]  %s1146_s1, 8192, %s30_s19, [#allocation5], %s1089_s21, %s1089_s21, %s1090_s22  }
   0xe   :  { %s1091_s25 = smov [#allocation2]  }
   0xf   :  { %s17_s26 = sshll.u32 %s1091_s25, 4  ;;  %s18_s26 = int_to_ptr.vmem [resolvable:$true] %s17_s26 }
  0x10   :  { %s1052_s27 = scalar_lea.vmem %s18_s26, 512  ;;  %s1056_s28 = scalar_lea.vmem %s18_s26, 1024 }
  0x11   :  { %p1053_p5 = scmp.ne.s32.totalorder %s18_s26, %s1052_s27  ;;  %p1057_p6 = scmp.lt.s32.totalorder %s18_s26, %s18_s26 }
  0x12   :  { %p1058_p7 = scmp.lt.s32.totalorder %s1056_s28, %s1052_s27 }
  0x14   :  { %p1059_p8 = por %p1058_p7, %p1057_p6 }
  0x16   :  { %p1060_p9 = pnand %p1059_p8, %p1053_p5 }
  0x18   :  { %1063 = shalt.err (!%p1060_p9)
}
  0x19   :  { %s1092_s29 = smov 512   ;;  %s1093_s30 = smov 32  }
  0x1a   :  { %23 = dma.hbm_to_vmem [thread:$0]  %s1145_s0, 512, %s18_s26, [#allocation3], %s1092_s29, %s1092_s29, %s1093_s30  }
  0x1b   :  { %s1094_s8 = smov [#allocation6]  }
  0x1c   :  { %s43_s9 = sshll.u32 %s1094_s8, 4  ;;  %s44_s9 = int_to_ptr.vmem [resolvable:$true] %s43_s9 }
  0x1d   :  { %s1072_s1 = scalar_lea.vmem %s44_s9, 2048  ;;  %p1077_p11 = scmp.lt.s32.totalorder %s44_s9, %s44_s9 }
  0x1e   :  { %p1073_p10 = scmp.ne.s32.totalorder %s44_s9, %s1072_s1  ;;  %p1078_p12 = scmp.lt.s32.totalorder %s1072_s1, %s1072_s1 }
  0x20   :  { %p1079_p13 = por %p1078_p12, %p1077_p11 }
  0x22   :  { %p1080_p0 = pnand %p1079_p13, %p1073_p10 }
  0x24   :  { %1083 = shalt.err (!%p1080_p0)
}
  0x25   :  { %s1095_s10 = smov 64   ;;  %s1096_s11 = smov 4  }
  0x26   :  { %49 = dma.hbm_to_vmem [thread:$0]  %s1148_s3, 2048, %s44_s9, [#allocation5], %s1095_s10, %s1095_s10, %s1096_s11  }
  0x27   :  { %1084 = dma.done.wait [#allocation3], 1024  }
  0x28   :  { %1085 = vsyncadd [#allocation3], 4294966272 }
  0x29   :  { %1086 = dma.done.wait [#allocation5], 10240  }
  0x2a   :  { %1087 = vsyncadd [#allocation5], 4294957056  ;;  %v912_v0 = vld [vmem:[#allocation4 + $0x74] ss:$8 sps:$4 sm:$0xff]   ;;  %v916_v2 = vld [vmem:[#allocation4 + $0x70] ss:$8 sps:$4 sm:$0xff]  }
  0x2b   :  { %v914_v1 = vld [vmem:[#allocation4 + $0x174] ss:$8 sps:$4 sm:$0xff]   ;;  %470 = vmatprep.subr.bf16.mxu0 %v912_v0  ;;  %v917_v3 = vld [vmem:[#allocation4 + $0x170] ss:$8 sps:$4 sm:$0xff]   ;;  %v918_v4 = vld [vmem:[#allocation4 + $0x64] ss:$8 sps:$4 sm:$0xff]  }
  0x2c   :  { %513 = vmatprep.subr.bf16.mxu1 %v914_v1  ;;  %471 = vmatpush1.bf16.msra.mxu0 %v916_v2  ;;  %v920_v5 = vld [vmem:[#allocation4 + $0x164] ss:$8 sps:$4 sm:$0xff]   ;;  %v922_v6 = vld [vmem:[#allocation4 + $0x60] ss:$8 sps:$4 sm:$0xff]   ;;  %v924_v8 = vld [vmem:[#allocation4 + $0x54] ss:$8 sps:$4 sm:$0xff]  }
  0x2d   :  { %514 = vmatpush1.bf16.msra.mxu1 %v917_v3  ;;  %472 = vmatprep.subr.bf16.mxu0 %v918_v4  ;;  %v923_v7 = vld [vmem:[#allocation4 + $0x160] ss:$8 sps:$4 sm:$0xff]   ;;  %v926_v9 = vld [vmem:[#allocation4 + $0x154] ss:$8 sps:$4 sm:$0xff]   ;;  %v928_v10 = vld [vmem:[#allocation4 + $0x50] ss:$8 sps:$4 sm:$0xff]  }
  0x2e   :  { %515 = vmatprep.subr.bf16.mxu1 %v920_v5  ;;  %v929_v11 = vld [vmem:[#allocation4 + $0x150] ss:$8 sps:$4 sm:$0xff]   ;;  %v930_v12 = vld [vmem:[#allocation4 + $0x44] ss:$8 sps:$4 sm:$0xff]   ;;  %v934_v14 = vld [vmem:[#allocation4 + $0x40] ss:$8 sps:$4 sm:$0xff]  }
  0x2f   :  { %v932_v13 = vld [vmem:[#allocation4 + $0x144] ss:$8 sps:$4 sm:$0xff]   ;;  %v935_v15 = vld [vmem:[#allocation4 + $0x140] ss:$8 sps:$4 sm:$0xff]   ;;  %v936_v16 = vld [vmem:[#allocation4 + $0x34] ss:$8 sps:$4 sm:$0xff]  }
  0x30   :  { %473 = vmatpush1.bf16.msra.mxu0 %v922_v6  ;;  %v938_v17 = vld [vmem:[#allocation4 + $0x134] ss:$8 sps:$4 sm:$0xff]   ;;  %v940_v18 = vld [vmem:[#allocation4 + $0x30] ss:$8 sps:$4 sm:$0xff]   ;;  %v942_v20 = vld [vmem:[#allocation4 + $0x24] ss:$8 sps:$4 sm:$0xff]  }
  0x31   :  { %516 = vmatpush1.bf16.msra.mxu1 %v923_v7  ;;  %474 = vmatprep.subr.bf16.mxu0 %v924_v8  ;;  %v941_v19 = vld [vmem:[#allocation4 + $0x130] ss:$8 sps:$4 sm:$0xff]   ;;  %v944_v21 = vld [vmem:[#allocation4 + $0x124] ss:$8 sps:$4 sm:$0xff]   ;;  %v946_v22 = vld [vmem:[#allocation4 + $0x20] ss:$8 sps:$4 sm:$0xff]  }
  0x32   :  { %517 = vmatprep.subr.bf16.mxu1 %v926_v9  ;;  %v947_v23 = vld [vmem:[#allocation4 + $0x120] ss:$8 sps:$4 sm:$0xff]   ;;  %v948_v24 = vld [vmem:[#allocation4 + $0x14] ss:$8 sps:$4 sm:$0xff]   ;;  %v952_v26 = vld [vmem:[#allocation4 + $0x10] ss:$8 sps:$4 sm:$0xff]  }
  0x33   :  { %v950_v25 = vld [vmem:[#allocation4 + $0x114] ss:$8 sps:$4 sm:$0xff]   ;;  %v953_v27 = vld [vmem:[#allocation4 + $0x110] ss:$8 sps:$4 sm:$0xff]   ;;  %v954_v28 = vld [vmem:[#allocation4 + $0x4] ss:$8 sps:$4 sm:$0xff]  }
  0x34   :  { %475 = vmatpush1.bf16.msra.mxu0 %v928_v10  ;;  %v956_v29 = vld [vmem:[#allocation4 + $0x104] ss:$8 sps:$4 sm:$0xff]   ;;  %v958_v30 = vld [vmem:[#allocation4] ss:$8 sps:$4 sm:$0xff]   ;;  %v960_v32 = vld [vmem:[#allocation4 + $0xf4] ss:$8 sps:$4 sm:$0xff]  }
  0x35   :  { %518 = vmatpush1.bf16.msra.mxu1 %v929_v11  ;;  %476 = vmatprep.subr.bf16.mxu0 %v930_v12  ;;  %v959_v31 = vld [vmem:[#allocation4 + $0x100] ss:$8 sps:$4 sm:$0xff]   ;;  %v962_v33 = vld [vmem:[#allocation4 + $0x1f4] ss:$8 sps:$4 sm:$0xff]   ;;  %v964_v34 = vld [vmem:[#allocation4 + $0xf0] ss:$8 sps:$4 sm:$0xff]  }
  0x36   :  { %519 = vmatprep.subr.bf16.mxu1 %v932_v13  ;;  %v965_v35 = vld [vmem:[#allocation4 + $0x1f0] ss:$8 sps:$4 sm:$0xff]   ;;  %v966_v36 = vld [vmem:[#allocation4 + $0xe4] ss:$8 sps:$4 sm:$0xff]   ;;  %v970_v38 = vld [vmem:[#allocation4 + $0xe0] ss:$8 sps:$4 sm:$0xff]  }
  0x37   :  { %v968_v37 = vld [vmem:[#allocation4 + $0x1e4] ss:$8 sps:$4 sm:$0xff]   ;;  %v971_v39 = vld [vmem:[#allocation4 + $0x1e0] ss:$8 sps:$4 sm:$0xff]   ;;  %v972_v40 = vld [vmem:[#allocation4 + $0xd4] ss:$8 sps:$4 sm:$0xff]  }
  0x38   :  { %477 = vmatpush1.bf16.msra.mxu0 %v934_v14  ;;  %v974_v41 = vld [vmem:[#allocation4 + $0x1d4] ss:$8 sps:$4 sm:$0xff]   ;;  %v976_v42 = vld [vmem:[#allocation4 + $0xd0] ss:$8 sps:$4 sm:$0xff]   ;;  %v978_v44 = vld [vmem:[#allocation4 + $0xc4] ss:$8 sps:$4 sm:$0xff]  }
  0x39   :  { %520 = vmatpush1.bf16.msra.mxu1 %v935_v15  ;;  %478 = vmatprep.subr.bf16.mxu0 %v936_v16  ;;  %v977_v43 = vld [vmem:[#allocation4 + $0x1d0] ss:$8 sps:$4 sm:$0xff]   ;;  %v980_v45 = vld [vmem:[#allocation4 + $0x1c4] ss:$8 sps:$4 sm:$0xff]   ;;  %v982_v50 = vld [vmem:[#allocation4 + $0xc0] ss:$8 sps:$4 sm:$0xff]  }
  0x3a   :  { %521 = vmatprep.subr.bf16.mxu1 %v938_v17  ;;  %v63_v46 = vld [vmem:[#allocation2 + $0x8] sm:$0xff]  ;;  %v65_v48 = vld [vmem:[#allocation2 + $0x18] sm:$0xff]  ;;  %v62_v6 = vld [vmem:[#allocation2] sm:$0xff] }
  0x3b   :  { %v67_v47 = vld [vmem:[#allocation2 + $0x28] sm:$0xff]  ;;  %v69_v49 = vld [vmem:[#allocation2 + $0x38] sm:$0xff]  ;;  %v66_v7 = vld [vmem:[#allocation2 + $0x20] sm:$0xff] }
  0x3c   :  { %479 = vmatpush1.bf16.msra.mxu0 %v940_v18  ;;  %v983_v51 = vld [vmem:[#allocation4 + $0x1c0] ss:$8 sps:$4 sm:$0xff]   ;;  %v984_v52 = vld [vmem:[#allocation4 + $0xb4] ss:$8 sps:$4 sm:$0xff]   ;;  %v71_v53 = vpack.c.bf16 %v67_v47, %v63_v46  ;;  %v73_v54 = vpack.c.bf16 %v69_v49, %v65_v48  ;;  %v988_v56 = vld [vmem:[#allocation4 + $0xb0] ss:$8 sps:$4 sm:$0xff]   ;;  %v70_v11 = vpack.c.bf16 %v66_v7, %v62_v6 }
  0x3d   :  { %522 = vmatpush1.bf16.msra.mxu1 %v941_v19  ;;  %480 = vmatprep.subr.bf16.mxu0 %v942_v20  ;;  %v986_v55 = vld [vmem:[#allocation4 + $0x1b4] ss:$8 sps:$4 sm:$0xff]   ;;  %v989_v57 = vld [vmem:[#allocation4 + $0x1b0] ss:$8 sps:$4 sm:$0xff]   ;;  %v990_v58 = vld [vmem:[#allocation4 + $0xa4] ss:$8 sps:$4 sm:$0xff]  }
  0x3e   :  { %523 = vmatprep.subr.bf16.mxu1 %v944_v21  ;;  %502 = vmatprep.mubr.bf16.mxu0 %v71_v53  ;;  %v992_v59 = vld [vmem:[#allocation4 + $0x1a4] ss:$8 sps:$4 sm:$0xff]   ;;  %v994_v60 = vld [vmem:[#allocation4 + $0xa0] ss:$8 sps:$4 sm:$0xff]   ;;  %v996_v62 = vld [vmem:[#allocation4 + $0x94] ss:$8 sps:$4 sm:$0xff]  }
  0x3f   :  { %545 = vmatprep.mubr.bf16.mxu1 %v73_v54  ;;  %v995_v61 = vld [vmem:[#allocation4 + $0x1a0] ss:$8 sps:$4 sm:$0xff]   ;;  %v998_v63 = vld [vmem:[#allocation4 + $0x194] ss:$8 sps:$4 sm:$0xff]   ;;  %v1000_v0 = vld [vmem:[#allocation4 + $0x90] ss:$8 sps:$4 sm:$0xff]  }
  0x40   :  { %481 = vmatpush1.bf16.msra.mxu0 %v946_v22  ;;  %v1001_v1 = vld [vmem:[#allocation4 + $0x190] ss:$8 sps:$4 sm:$0xff]   ;;  %v1002_v2 = vld [vmem:[#allocation4 + $0x84] ss:$8 sps:$4 sm:$0xff]   ;;  %v1006_v4 = vld [vmem:[#allocation4 + $0x80] ss:$8 sps:$4 sm:$0xff]  }
  0x41   :  { %524 = vmatpush1.bf16.msra.mxu1 %v947_v23  ;;  %482 = vmatprep.subr.bf16.mxu0 %v948_v24  ;;  %v1004_v3 = vld [vmem:[#allocation4 + $0x184] ss:$8 sps:$4 sm:$0xff]   ;;  %v1007_v5 = vld [vmem:[#allocation4 + $0x180] ss:$8 sps:$4 sm:$0xff]   ;;  %v64_v8 = vld [vmem:[#allocation2 + $0x10] sm:$0xff] }
  0x42   :  { %525 = vmatprep.subr.bf16.mxu1 %v950_v25  ;;  %v68_v9 = vld [vmem:[#allocation2 + $0x30] sm:$0xff]  ;;  %v1008_v10 = vld [vmem:[#allocation6 + $0x78] sm:$0xff]   ;;  %v1012_v16 = vld [vmem:[#allocation6 + $0x68] sm:$0xff]  }
  0x43   :  { %v72_v12 = vpack.c.bf16 %v68_v9, %v64_v8  ;;  %v1009_v13 = vld [vmem:[#allocation6 + $0x38] sm:$0xff]   ;;  %v1010_v14 = vld [vmem:[#allocation6 + $0x70] sm:$0xff]   ;;  %v1013_v17 = vld [vmem:[#allocation6 + $0x28] sm:$0xff]  }
  0x44   :  { %483 = vmatpush1.bf16.msra.mxu0 %v952_v26  ;;  %v1011_v15 = vld [vmem:[#allocation6 + $0x30] sm:$0xff]   ;;  %v1014_v18 = vld [vmem:[#allocation6 + $0x60] sm:$0xff]   ;;  %v1016_v20 = vld [vmem:[#allocation6 + $0x58] sm:$0xff]  }
  0x45   :  { %526 = vmatpush1.bf16.msra.mxu1 %v953_v27  ;;  %484 = vmatprep.subr.bf16.mxu0 %v954_v28  ;;  %v1015_v19 = vld [vmem:[#allocation6 + $0x20] sm:$0xff]   ;;  %v1017_v21 = vld [vmem:[#allocation6 + $0x18] sm:$0xff]   ;;  %v1018_v22 = vld [vmem:[#allocation6 + $0x50] sm:$0xff]   ;;  %v140_v28 = vlaneseq }
  0x46   :  { %527 = vmatprep.subr.bf16.mxu1 %v956_v29  ;;  %v1019_v23 = vld [vmem:[#allocation6 + $0x10] sm:$0xff]   ;;  %v1020_v24 = vld [vmem:[#allocation6 + $0x48] sm:$0xff]   ;;  %v1022_v26 = vld [vmem:[#allocation6 + $0x40] sm:$0xff]  }
  0x47   :  { %v1021_v25 = vld [vmem:[#allocation6 + $0x8] sm:$0xff]   ;;  %v1023_v27 = vld [vmem:[#allocation6] sm:$0xff]   ;;  %v141_v29 = vshrl.u32 %v140_v28, 7 }
  0x48   :  { %485 = vmatpush1.bf16.msra.mxu0 %v958_v30 }
  0x49   :  { %528 = vmatpush1.bf16.msra.mxu1 %v959_v31  ;;  %486 = vmatprep.subr.bf16.mxu0 %v960_v32  ;;  %v146_v30 = vsub.s32 1, %v141_v29  ;;  %v142_v31 = vsub.s32 0, %v141_v29  ;;  %v138_v32 = vld [vmem:[%s1147_s2] sm:$0x3] }
  0x4a   :  { %529 = vmatprep.subr.bf16.mxu1 %v962_v33 }
  0x4b   :  { %v147_v33 = vrot.slane %v138_v32, %v146_v30 }
  0x4c   :  { %487 = vmatpush2.bf16.msra.mxu0 %v964_v34  ;;  %v143_v34 = vrot.slane %v138_v32, %v142_v31 }
  0x4d   :  { %530 = vmatpush2.bf16.msra.mxu1 %v965_v35  ;;  %488 = vmatprep.subr.bf16.mxu0 %v966_v36 }
  0x4e   :  { %531 = vmatprep.subr.bf16.mxu1 %v968_v37 }
  0x50   :  { %489 = vmatpush2.bf16.msra.mxu0 %v970_v38 }
  0x51   :  { %532 = vmatpush2.bf16.msra.mxu1 %v971_v39  ;;  %490 = vmatprep.subr.bf16.mxu0 %v972_v40 }
  0x52   :  { %533 = vmatprep.subr.bf16.mxu1 %v974_v41 }
  0x54   :  { %491 = vmatpush2.bf16.msra.mxu0 %v976_v42 }
  0x55   :  { %534 = vmatpush2.bf16.msra.mxu1 %v977_v43  ;;  %492 = vmatprep.subr.bf16.mxu0 %v978_v44 }
  0x56   :  { %535 = vmatprep.subr.bf16.mxu1 %v980_v45 }
  0x58   :  { %493 = vmatpush2.bf16.msra.mxu0 %v982_v50 }
  0x59   :  { %536 = vmatpush2.bf16.msra.mxu1 %v983_v51  ;;  %494 = vmatprep.subr.bf16.mxu0 %v984_v52 }
  0x5a   :  { %537 = vmatprep.subr.bf16.mxu1 %v986_v55 }
  0x5c   :  { %495 = vmatpush2.bf16.msra.mxu0 %v988_v56 }
  0x5d   :  { %538 = vmatpush2.bf16.msra.mxu1 %v989_v57  ;;  %496 = vmatprep.subr.bf16.mxu0 %v990_v58 }
  0x5e   :  { %539 = vmatprep.subr.bf16.mxu1 %v992_v59 }
  0x60   :  { %497 = vmatpush2.bf16.msra.mxu0 %v994_v60 }
  0x61   :  { %540 = vmatpush2.bf16.msra.mxu1 %v995_v61  ;;  %498 = vmatprep.subr.bf16.mxu0 %v996_v62  ;;  %v855_v61 = vld [vmem:[%s1149_s4] ss:$0 sm:$0xff] }
  0x62   :  { %541 = vmatprep.subr.bf16.mxu1 %v998_v63 }
  0x64   :  { %499 = vmatpush2.bf16.msra.mxu0 %v1000_v0 }
  0x65   :  { %542 = vmatpush2.bf16.msra.mxu1 %v1001_v1  ;;  %500 = vmatprep.subr.bf16.mxu0 %v1002_v2 }
  0x66   :  { %543 = vmatprep.subr.bf16.mxu1 %v1004_v3 }
  0x68   :  { %501 = vmatpush2.bf16.msra.mxu0 %v1006_v4 }
  0x69   :  { %544 = vmatpush2.bf16.msra.mxu1 %v1007_v5  ;;  %881 = vmatprep.subr.bf16.mxu0 %v1008_v10 }
  0x6b   :  { %503 = vmatmul.mubr.bf16.vlgmr.msra.gmra.mxu0 %v70_v11 }
  0x6c   :  { %546 = vmatmul.mubr.bf16.vlgmr.msra.gmra.mxu1 %v72_v12  ;;  %882 = vmatpush3.bf16.msra.mxu0 %v1009_v13 }
  0x6d   :  { %883 = vmatprep.subr.bf16.mxu0 %v1010_v14 }
  0x70   :  { %884 = vmatpush3.bf16.msra.mxu0 %v1011_v15 }
  0x71   :  { %885 = vmatprep.subr.bf16.mxu0 %v1012_v16 }
  0x74   :  { %886 = vmatpush3.bf16.msra.mxu0 %v1013_v17 }
  0x75   :  { %887 = vmatprep.subr.bf16.mxu0 %v1014_v18 }
  0x78   :  { %888 = vmatpush3.bf16.msra.mxu0 %v1015_v19 }
  0x79   :  { %889 = vmatprep.subr.bf16.mxu0 %v1016_v20 }
  0x7c   :  { %890 = vmatpush3.bf16.msra.mxu0 %v1017_v21 }
  0x7d   :  { %891 = vmatprep.subr.bf16.mxu0 %v1018_v22 }
  0x80   :  { %892 = vmatpush3.bf16.msra.mxu0 %v1019_v23 }
  0x81   :  { %893 = vmatprep.subr.bf16.mxu0 %v1020_v24 }
  0x84   :  { %894 = vmatpush3.bf16.msra.mxu0 %v1021_v25 }
  0x85   :  { %895 = vmatprep.subr.bf16.mxu0 %v1022_v26 }
  0x88   :  { %896 = vmatpush3.bf16.msra.mxu0 %v1023_v27 }
 0x12b   :  { %v504_v35 = vpop.f32.mrf.mxu0 }
 0x12c   :  { %v547_v36 = vpop.f32.mrf.mxu1  ;;  %v505_v40 = vadd.f32 %v504_v35, %v143_v34 }
 0x12d   :  { %v506_v37 = vpop.f32.mrf.mxu0 }
 0x12e   :  { %v549_v38 = vpop.f32.mrf.mxu1  ;;  %v507_v39 = vadd.f32 %v506_v37, %v147_v33  ;;  %v548_v48 = vadd.f32 %v547_v36, %v505_v40 }
 0x12f   :  { %v508_v41 = vpop.f32.mrf.mxu0 }
 0x130   :  { %v551_v42 = vpop.f32.mrf.mxu1  ;;  %v509_v43 = vadd.f32 %v508_v41, %v143_v34  ;;  %v550_v45 = vadd.f32 %v549_v38, %v507_v39  ;;  %v556_v54 = vmax.f32 %v548_v48, 0.0 }
 0x131   :  { %v510_v44 = vpop.f32.mrf.mxu0 }
 0x132   :  { %v552_v46 = vadd.f32 %v551_v42, %v509_v43  ;;  %v511_v47 = vadd.f32 %v510_v44, %v147_v33  ;;  %v553_v49 = vpop.f32.mrf.mxu1  ;;  %v557_v52 = vmax.f32 %v550_v45, 0.0 }
 0x134   :  { %v554_v50 = vadd.f32 %v553_v49, %v511_v47  ;;  %v558_v51 = vmax.f32 %v552_v46, 0.0 }
 0x136   :  { %v559_v53 = vmax.f32 %v554_v50, 0.0  ;;  %v560_v56 = vpack.c.bf16 %v558_v51, %v556_v54 }
 0x138   :  { %v561_v55 = vpack.c.bf16 %v559_v53, %v557_v52 }
 0x13a   :  { %729 = vmatprep.mubr.bf16.mxu0 %v561_v55 }
 0x13b   :  { %730 = vmatmul.mubr.bf16.vlgmr.msra.gmra.mxu0 %v560_v56 }
 0x1fb   :  { %v897_v57 = vpop.f32.mrf.mxu0 }
 0x1fd   :  { %v898_v58 = vpop.f32.mrf.mxu0 }
 0x1fe   :  { %v899_v60 = vadd.f32 %v898_v58, %v897_v57 }
 0x1ff   :  { %v900_v59 = vpop.f32.mrf.mxu0 }
 0x200   :  { %v732_v0 = vadd.f32 %v899_v60, %v855_v61 }
 0x201   :  { %v901_v62 = vpop.f32.mrf.mxu0 }
 0x202   :  { %v902_v63 = vadd.f32 %v901_v62, %v900_v59 }
 0x204   :  { %v735_v1 = vadd.f32 %v902_v63, %v855_v61 }
 0x206   :  { %v879_v2 = vpack.c.bf16 %v735_v1, %v732_v0 }
 0x208   :  { %880 = vst [vmem:[#allocation7] sm:$0xff] %v879_v2  }
 0x20f   :  { %v766_v3 = vld [vmem:[#allocation7] sm:$0xf] }
 0x210   :  { %767 = vst [vmem:[%s1150_s5] sm:$0xf] %v766_v3 }
 0x211   :  { %785 = vsyncpa [#allocation3], 1 }
 0x212   :  { %786 = vsyncpa [#allocation5], 1 }

</bundles_post_ra>
